<compile_context>
chip_gen: v6e
topology: v6e:2x2x1
jax: 0.10.0
libtpu: 0.0.40
codegen_flags: <defaults>
</compile_context>

<pallas_src>
import jax
import jax.numpy as jnp
from jax.experimental import pallas as pl
from jax.experimental.pallas import tpu as pltpu

_LANE = 128
_TILE_BYTES_BUDGET = 2 * 1024 * 1024  # per x-tile f32 budget; ×2 buffers ×(in+out) << VMEM


def rbf_kernel(x_ref, coef_ref, o_ref):
    """o = exp(a*x^2 + b*x + c); math in f32 regardless of I/O dtype."""
    x = x_ref[...].astype(jnp.float32)        # (TR, W)
    a = coef_ref[0:1, :]                      # (1, W) — broadcast over rows
    b = coef_ref[1:2, :]
    c = coef_ref[2:3, :]
    o_ref[...] = jnp.exp(x * (a * x + b) + c).astype(o_ref.dtype)


def _pick_block_rows(R, W):
    """Rows per tile: multiple of 8 dividing R, within the VMEM tile budget,
    and keeping >= 2 grid steps when R allows it (DMA/compute overlap)."""
    if R <= 8 or R % 8 != 0:
        return R                              # single full-extent tile
    max_rows = max(8, _TILE_BYTES_BUDGET // (W * 4))
    best = 8
    for cand in range(8, R + 1, 8):
        if cand > max_rows:
            break
        if R % cand == 0 and R // cand >= 2:
            best = cand
    return best


def rbf_layer(x, mu, betas, *, block_rows=None):
    """Pallas implementation of RBFLayer.forward.

    x:     (..., D) float32 / bf16
    mu:    (D, U)   float32
    betas: (D,)     float32
    returns (..., D) in x.dtype
    """
    orig_shape = x.shape
    D = orig_shape[-1]
    U = mu.shape[1]
    B = 1
    for s in orig_shape[:-1]:
        B *= s
    x = x.reshape(B, D)

    # Closed-form per-feature coefficients: tiny O(D*U) one-off work in plain JAX.
    mu32 = mu.astype(jnp.float32)
    beta32 = betas.astype(jnp.float32)
    s1 = jnp.sum(mu32, axis=1)                 # (D,)
    s2 = jnp.sum(mu32 * mu32, axis=1)          # (D,)
    a = -beta32 * jnp.float32(U)               # (D,)
    b = 2.0 * beta32 * s1                      # (D,)
    c = -beta32 * s2                           # (D,)

    # Lane-dense layout: flatten (B, D) -> (R, 128) when D tiles 128 exactly.
    if D < _LANE and _LANE % D == 0 and (B * D) % _LANE == 0:
        W = _LANE
        rep = _LANE // D
        R = (B * D) // _LANE
        x2 = x.reshape(R, W)
        a2 = jnp.tile(a, rep)
        b2 = jnp.tile(b, rep)
        c2 = jnp.tile(c, rep)
    else:
        W = D
        R = B
        x2 = x
        a2, b2, c2 = a, b, c

    coef = jnp.stack([a2, b2, c2], axis=0)     # (3, W), resident across grid steps

    if block_rows is None:
        block_rows = _pick_block_rows(R, W)
    assert R % block_rows == 0
    assert block_rows == R or block_rows % 8 == 0, (
        "block_rows must be a multiple of 8 or equal to the row count")

    out = pl.pallas_call(
        rbf_kernel,
        out_shape=jax.ShapeDtypeStruct((R, W), x.dtype),
        grid=(R // block_rows,),
        in_specs=[
            pl.BlockSpec((block_rows, W), lambda i: (i, 0)),   # x: stream row tiles
            pl.BlockSpec((3, W), lambda i: (0, 0)),            # coefficients: resident
        ],
        out_specs=pl.BlockSpec((block_rows, W), lambda i: (i, 0)),
        compiler_params=pltpu.CompilerParams(
            dimension_semantics=("parallel",),
            vmem_limit_bytes=32 * 1024 * 1024,   # tiny working set; headroom on v7x
        ),
    )(x2, coef)

    return out.reshape(orig_shape)


if __name__ == "__main__":
    # Small shapes consistent with the module: inputs (B, D), units U.
    B, D, U = 8, 32, 16
    gamma = 0.5

    key = jax.random.PRNGKey(0)
    kx, kmu = jax.random.split(key)

    x = jax.random.normal(kx, (B, D), dtype=jnp.float32)
    # reset_parameters: mu ~ Uniform(0.001, 0.005) of shape (D, U); betas = full(gamma, (D,))
    mu = jax.random.uniform(kmu, (D, U), dtype=jnp.float32,
                            minval=0.001, maxval=0.005)
    betas = jnp.full((D,), gamma, dtype=jnp.float32)

    out = jax.block_until_ready(rbf_layer(x, mu, betas))

    # Pure-JAX reference with the exact PyTorch reduction order.
    diff = x[:, :, None] - mu[None, :, :]
    l2 = jnp.sum(diff * diff, axis=-1)
    ref = jnp.exp(-betas[None, :] * l2)
    assert out.shape == (B, D)
    assert jnp.allclose(out, ref, atol=1e-5, rtol=1e-5), float(jnp.max(jnp.abs(out - ref)))

    print("KERNEL_OK")
</pallas_src>

<mosaic_0001>
module attributes {stable_mosaic.version = 11 : i64} {
  func.func @rbf_kernel(%arg0: i32, %arg1: memref<2x128xf32, #tpu.memory_space<vmem>>, %arg2: memref<3x128xf32, #tpu.memory_space<vmem>>, %arg3: memref<2x128xf32, #tpu.memory_space<vmem>>) attributes {dimension_semantics = [#tpu.dimension_semantics<parallel>], iteration_bounds = array<i64: 1>, scalar_prefetch = 0 : i64, scratch_operands = 0 : i64, tpu.core_type = #tpu.core_type<tc>, window_params = [{transform_indices = @transform_0, window_bounds = array<i64: 2, 128>}, {pipeline_mode = #tpu.pipeline_mode<synchronous>, transform_indices = @transform_1, window_bounds = array<i64: 3, 128>}, {transform_indices = @transform_2, window_bounds = array<i64: 2, 128>}]} {
    %c0 = arith.constant 0 : index
    %c0_0 = arith.constant 0 : index
    %0 = vector.load %arg1[%c0, %c0_0] : memref<2x128xf32, #tpu.memory_space<vmem>>, vector<2x128xf32>
    %c0_1 = arith.constant 0 : index
    %c0_2 = arith.constant 0 : index
    %1 = vector.load %arg2[%c0_1, %c0_2] : memref<3x128xf32, #tpu.memory_space<vmem>>, vector<1x128xf32>
    %c1 = arith.constant 1 : index
    %c0_3 = arith.constant 0 : index
    %2 = vector.load %arg2[%c1, %c0_3] : memref<3x128xf32, #tpu.memory_space<vmem>>, vector<1x128xf32>
    %c2 = arith.constant 2 : index
    %c0_4 = arith.constant 0 : index
    %3 = vector.load %arg2[%c2, %c0_4] : memref<3x128xf32, #tpu.memory_space<vmem>>, vector<1x128xf32>
    %4 = vector.broadcast %1 : vector<1x128xf32> to vector<2x128xf32>
    %5 = arith.mulf %4, %0 : vector<2x128xf32>
    %6 = vector.broadcast %2 : vector<1x128xf32> to vector<2x128xf32>
    %7 = arith.addf %5, %6 : vector<2x128xf32>
    %8 = arith.mulf %0, %7 : vector<2x128xf32>
    %9 = vector.broadcast %3 : vector<1x128xf32> to vector<2x128xf32>
    %10 = arith.addf %8, %9 : vector<2x128xf32>
    %11 = math.exp %10 : vector<2x128xf32>
    %c0_5 = arith.constant 0 : index
    %c0_6 = arith.constant 0 : index
    %12 = vector.load %arg3[%c0_5, %c0_6] : memref<2x128xf32, #tpu.memory_space<vmem>>, vector<2x128xf32>
    tpu.vector_store %arg3[%c0_5, %c0_6], %11 {strides = array<i32>} : memref<2x128xf32, #tpu.memory_space<vmem>>, vector<2x128xf32>,
    return
  }
  func.func @transform_0(%arg0: i32) -> (i32, i32) {
    %c0_i32 = arith.constant 0 : i32
    %c0_i32_0 = arith.constant 0 : i32
    return %arg0, %c0_i32 : i32, i32
  }
  func.func @transform_1(%arg0: i32) -> (i32, i32) {
    %c0_i32 = arith.constant 0 : i32
    %c0_i32_0 = arith.constant 0 : i32
    %c0_i32_1 = arith.constant 0 : i32
    return %c0_i32, %c0_i32_0 : i32, i32
  }
  func.func @transform_2(%arg0: i32) -> (i32, i32) {
    %c0_i32 = arith.constant 0 : i32
    %c0_i32_0 = arith.constant 0 : i32
    return %arg0, %c0_i32 : i32, i32
  }
}

</mosaic_0001>

<bundles_post_ra>
// kernel: tpu_custom_call.1
= control target key start
LH: loop header
LB: loop body
LE: loop exit
PB: predicated region body
PF: predicated region fallthrough
CT: control target
= control target key end

     0   :  { %7 = vsyncpa [#allocation3], 0  ;;  %s176_s0 = inlined_call_operand.hbm [shape: f32[2,128], index: 0, kind: input, shape index: {}]   ;;  %s177_s1 = inlined_call_operand.hbm [shape: f32[3,128], index: 1, kind: input, shape index: {}]   ;;  %s178_s2 = inlined_call_operand.hbm [shape: f32[2,128], index: 2, kind: output, shape index: {}]  }
   0x1   :  { %8 = vsyncpa [#allocation6], 0 }
   0x2   :  { %9 = vsyncpa [#allocation4], 0  ;;  %s149_s9 = smov [#allocation2]   ;;  %s150_s11 = smov [#allocation5]  }
   0x3   :  { %s16_s10 = sshll.u32 %s149_s9, 4  ;;  %s26_s12 = sshll.u32 %s150_s11, 4  ;;  %s17_s10 = int_to_ptr.vmem [resolvable:$true] %s16_s10  ;;  %s27_s12 = int_to_ptr.vmem [resolvable:$true] %s26_s12 }
   0x4   :  { %s91_s13 = scalar_lea.vmem %s17_s10, 32  ;;  %p96_p1 = scmp.lt.s32.totalorder %s17_s10, %s17_s10 }
   0x5   :  { %p92_p0 = scmp.ne.s32.totalorder %s17_s10, %s91_s13  ;;  %p97_p2 = scmp.lt.s32.totalorder %s91_s13, %s91_s13 }
   0x7   :  { %p98_p3 = por %p97_p2, %p96_p1 }
   0x9   :  { %p99_p4 = pnand %p98_p3, %p92_p0 }
   0xb   :  { %102 = shalt.err (!%p99_p4)
}
   0xc   :  { %19 = dma.hbm_to_vmem [thread:$0]  %s176_s0, 32, %s17_s10, [#allocation3]  }
   0xd   :  { %s111_s16 = scalar_lea.vmem %s27_s12, 64  ;;  %p116_p6 = scmp.lt.s32.totalorder %s27_s12, %s27_s12 }
   0xe   :  { %p112_p5 = scmp.ne.s32.totalorder %s27_s12, %s111_s16  ;;  %p117_p7 = scmp.lt.s32.totalorder %s111_s16, %s111_s16 }
  0x10   :  { %p118_p8 = por %p117_p7, %p116_p6 }
  0x12   :  { %p119_p9 = pnand %p118_p8, %p112_p5 }
  0x14   :  { %122 = shalt.err (!%p119_p9)
}
  0x15   :  { %29 = dma.hbm_to_vmem [thread:$0]  %s177_s1, 64, %s27_s12, [#allocation6]  }
  0x16   :  { %143 = dma.done.wait [#allocation3], 32  }
  0x17   :  { %144 = vsyncadd [#allocation3], 4294967264 }
  0x18   :  { %145 = dma.done.wait [#allocation6], 64  }
  0x19   :  { %146 = vsyncadd [#allocation6], 4294967232  ;;  %v36_v0 = vld [vmem:[#allocation2] sm:$0x3]  ;;  %v75_v1 = vld [vmem:[#allocation5] ss:$0 sm:$0xff] }
  0x1a   :  { %v76_v2 = vld [vmem:[#allocation5 + $0x1] ss:$0 sm:$0xff]  ;;  %v44_v3 = vmul.f32 %v75_v1, %v36_v0  ;;  %v77_v5 = vld [vmem:[#allocation5 + $0x2] ss:$0 sm:$0xff]  ;;  %s151_s0 = smov [#allocation7]  }
  0x1b   :  { %s65_s19 = sshll.u32 %s151_s0, 4  ;;  %s66_s19 = int_to_ptr.vmem [resolvable:$true] %s65_s19 }
  0x1c   :  { %v49_v4 = vadd.f32 %v76_v2, %v44_v3  ;;  %s123_s1 = scalar_lea.vmem %s66_s19, 32  ;;  %p128_p11 = scmp.lt.s32.totalorder %s66_s19, %s66_s19 }
  0x1d   :  { %p124_p10 = scmp.ne.s32.totalorder %s66_s19, %s123_s1  ;;  %p129_p12 = scmp.lt.s32.totalorder %s123_s1, %s123_s1 }
  0x1e   :  { %v50_v6 = vmul.f32 %v49_v4, %v36_v0 }
  0x1f   :  { %p130_p13 = por %p129_p12, %p128_p11 }
  0x20   :  { %v55_v7 = vadd.f32 %v77_v5, %v50_v6 }
  0x21   :  { %p131_p0 = pnand %p130_p13, %p124_p10 }
  0x22   :  { %v56_v8 = vmul.f32 1.442695, %v55_v7 }
  0x24   :  { %81 = vpow2.f32 %v56_v8 }
  0x31   :  { %v82_v9 = vpop.eup %81 }
  0x32   :  { %58 = vst [vmem:[#allocation7] sm:$0x3] %v82_v9 }
  0x33   :  { %134 = shalt.err (!%p131_p0)
}
  0x34   :  { %68 = dma.vmem_to_hbm [thread:$0]  %s66_s19, 32, %s178_s2, [#allocation4]  }
  0x35   :  { %147 = dma.done.wait [#allocation4], 32  }
  0x36   :  { %148 = vsyncadd [#allocation4], 4294967264 }
  0x37   :  { %72 = vsyncpa [#allocation3], 1 }
  0x38   :  { %73 = vsyncpa [#allocation6], 1 }
  0x39   :  { %74 = vsyncpa [#allocation4], 1 }

</bundles_post_ra>
